<compile_context>
chip_gen: v6e
topology: v6e:2x2x1
jax: 0.10.0
libtpu: 0.0.40
codegen_flags: <defaults>
</compile_context>

<pallas_src>
import functools

import jax
import jax.numpy as jnp
from jax.experimental import pallas as pl
from jax.experimental.pallas import tpu as pltpu


def _gce_kernel(logits_ref, targets_ref, out_ref, *, q, n_total, block_rows):
    # logits_ref : VMEM (TN, C) float
    # targets_ref: VMEM (TN, 1) int32
    # out_ref    : SMEM (1, 1) float32  (partial sum for this block)
    pid = pl.program_id(0)
    logits = logits_ref[...].astype(jnp.float32)        # (TN, C)
    targets = targets_ref[...]                          # (TN, 1) int32
    tn, c = logits.shape

    # One-hot lane mask of the target class per row (gather replacement).
    col_ids = jax.lax.broadcasted_iota(jnp.int32, (tn, c), 1)
    onehot = (col_ids == targets).astype(jnp.float32)   # (TN, C)

    # Stable log-sum-exp + target logit (no softmax / log-softmax tensors).
    m = jnp.max(logits, axis=-1, keepdims=True)          # (TN, 1)
    z = logits - m                                       # (TN, C)
    se = jnp.sum(jnp.exp(z), axis=-1, keepdims=True)     # (TN, 1)
    zt = jnp.sum(z * onehot, axis=-1, keepdims=True)     # (TN, 1)  target shifted logit

    ce = jnp.log(se) - zt                                # -log p_target
    # weight = p_target**q * q  ==  q * exp(-q * ce)   (no pow, no log(0))
    weight = jnp.float32(q) * jnp.exp(jnp.float32(-q) * ce)
    loss = ce * weight                                   # (TN, 1)

    # Mask out padded rows of a partial last block (garbage reads -> 0).
    row_ids = jax.lax.broadcasted_iota(jnp.int32, (tn, 1), 0) + pid * block_rows
    loss = jnp.where(row_ids < n_total, loss, jnp.float32(0.0))

    out_ref[0, 0] = jnp.sum(loss)


def generalized_ce_loss(logits, targets, q=0.7, block_rows=512):
    """logits: (N, C) float array, targets: (N,) int array -> scalar f32 loss."""
    n, c = logits.shape
    t = targets.astype(jnp.int32).reshape(n, 1)

    if n <= block_rows:
        tn = n                                # full-array block (always legal)
    else:
        tn = max(8, (block_rows // 8) * 8)    # multiple of 8 (sublane constraint)
        # Keep double-buffered logits blocks <= ~20 MiB of VMEM.
        while tn > 8 and 2 * tn * c * logits.dtype.itemsize > (20 << 20):
            tn //= 2
        tn = max(8, (tn // 8) * 8)
    grid = pl.cdiv(n, tn)

    partial = pl.pallas_call(
        functools.partial(_gce_kernel, q=q, n_total=n, block_rows=tn),
        out_shape=jax.ShapeDtypeStruct((grid, 1), jnp.float32),
        grid=(grid,),
        in_specs=[
            pl.BlockSpec((tn, c), lambda i: (i, 0)),
            pl.BlockSpec((tn, 1), lambda i: (i, 0)),
        ],
        out_specs=pl.BlockSpec(
            (1, 1), lambda i: (i, 0), memory_space=pltpu.MemorySpace.SMEM
        ),
        compiler_params=pltpu.CompilerParams(
            dimension_semantics=("parallel",),
            vmem_limit_bytes=32 << 20,
        ),
    )(logits, t)

    # Reduce per-block partial sums; divide by the GLOBAL batch size.
    return jnp.sum(partial) / jnp.float32(n)


def _reference_gce(logits, targets, q=0.7):
    # Plain-JAX reference mirroring the PyTorch forward.
    logits = logits.astype(jnp.float32)
    logp = jax.nn.log_softmax(logits, axis=1)
    p = jnp.exp(logp)
    yg = jnp.take_along_axis(p, targets[:, None], axis=1)[:, 0]
    ce = -jnp.take_along_axis(logp, targets[:, None], axis=1)[:, 0]
    weight = yg ** q * q
    return jnp.mean(ce * weight)


if __name__ == "__main__":
    key = jax.random.PRNGKey(0)
    k1, k2 = jax.random.split(key)

    N, C = 8, 32  # small shapes consistent with an (N, C) classification head
    logits = jax.random.normal(k1, (N, C), dtype=jnp.float32)
    targets = jax.random.randint(k2, (N,), 0, C, dtype=jnp.int32)

    loss = generalized_ce_loss(logits, targets, q=0.7)
    jax.block_until_ready(loss)

    ref = _reference_gce(logits, targets, q=0.7)
    assert jnp.allclose(loss, ref, rtol=1e-5, atol=1e-5), (loss, ref)

    print("KERNEL_OK")
</pallas_src>

<mosaic_0001>
module attributes {stable_mosaic.version = 11 : i64} {
  func.func @_gce_kernel(%arg0: i32, %arg1: memref<8x32xf32, #tpu.memory_space<vmem>>, %arg2: memref<8x1xi32, #tpu.memory_space<vmem>>, %arg3: memref<1x1xf32, #tpu.memory_space<smem>>) attributes {dimension_semantics = [#tpu.dimension_semantics<parallel>], iteration_bounds = array<i64: 1>, scalar_prefetch = 0 : i64, scratch_operands = 0 : i64, tpu.core_type = #tpu.core_type<tc>, window_params = [{transform_indices = @transform_0, window_bounds = array<i64: 8, 32>}, {transform_indices = @transform_1, window_bounds = array<i64: 8, 1>}, {transform_indices = @transform_2, window_bounds = array<i64: 1, 1>}]} {
    %c0 = arith.constant 0 : index
    %c0_0 = arith.constant 0 : index
    %0 = vector.load %arg1[%c0, %c0_0] : memref<8x32xf32, #tpu.memory_space<vmem>>, vector<8x32xf32>
    %c0_1 = arith.constant 0 : index
    %c0_2 = arith.constant 0 : index
    %1 = vector.load %arg2[%c0_1, %c0_2] : memref<8x1xi32, #tpu.memory_space<vmem>>, vector<8x1xi32>
    %2 = tpu.iota {dimensions = array<i32: 1>} : vector<8x32xi32>
    %3 = vector.broadcast %1 : vector<8x1xi32> to vector<8x32xi32>
    %4 = arith.cmpi eq, %2, %3 : vector<8x32xi32>
    %5 = arith.extui %4 : vector<8x32xi1> to vector<8x32xi32>
    %6 = arith.sitofp %5 : vector<8x32xi32> to vector<8x32xf32>
    %cst = arith.constant dense<0xFF800000> : vector<8xf32>
    %7 = vector.multi_reduction <maximumf>, %0, %cst [1] : vector<8x32xf32> to vector<8xf32>
    %8 = vector.shape_cast %7 : vector<8xf32> to vector<8x1xf32>
    %9 = vector.broadcast %8 : vector<8x1xf32> to vector<8x32xf32>
    %10 = arith.subf %0, %9 : vector<8x32xf32>
    %11 = math.exp %10 : vector<8x32xf32>
    %cst_3 = arith.constant dense<0.000000e+00> : vector<8xf32>
    %12 = vector.multi_reduction <add>, %11, %cst_3 [1] : vector<8x32xf32> to vector<8xf32>
    %13 = vector.shape_cast %12 : vector<8xf32> to vector<8x1xf32>
    %14 = arith.mulf %10, %6 : vector<8x32xf32>
    %cst_4 = arith.constant dense<0.000000e+00> : vector<8xf32>
    %15 = vector.multi_reduction <add>, %14, %cst_4 [1] : vector<8x32xf32> to vector<8xf32>
    %16 = vector.shape_cast %15 : vector<8xf32> to vector<8x1xf32>
    %17 = math.log %13 : vector<8x1xf32>
    %18 = arith.subf %17, %16 : vector<8x1xf32>
    %cst_5 = arith.constant -0.699999988 : f32
    %19 = vector.broadcast %cst_5 : f32 to vector<8x1xf32>
    %20 = arith.mulf %19, %18 : vector<8x1xf32>
    %21 = math.exp %20 : vector<8x1xf32>
    %cst_6 = arith.constant 0.699999988 : f32
    %22 = vector.broadcast %cst_6 : f32 to vector<8x1xf32>
    %23 = arith.mulf %22, %21 : vector<8x1xf32>
    %24 = arith.mulf %18, %23 : vector<8x1xf32>
    %25 = tpu.iota {dimensions = array<i32: 0>} : vector<8x1xi32>
    %c8_i32 = arith.constant 8 : i32
    %26 = arith.muli %arg0, %c8_i32 : i32
    %27 = vector.broadcast %26 : i32 to vector<8x1xi32>
    %28 = arith.addi %25, %27 : vector<8x1xi32>
    %c8_i32_7 = arith.constant 8 : i32
    %29 = vector.broadcast %c8_i32_7 : i32 to vector<8x1xi32>
    %30 = arith.cmpi slt, %28, %29 : vector<8x1xi32>
    %cst_8 = arith.constant 0.000000e+00 : f32
    %31 = vector.broadcast %cst_8 : f32 to vector<8x1xf32>
    %32 = arith.select %30, %24, %31 : vector<8x1xi1>, vector<8x1xf32>
    %33 = vector.shape_cast %32 : vector<8x1xf32> to vector<1x8x1xf32>
    %cst_9 = arith.constant dense<0.000000e+00> : vector<1xf32>
    %34 = vector.multi_reduction <add>, %33, %cst_9 [1, 2] : vector<1x8x1xf32> to vector<1xf32>
    %35 = vector.shape_cast %34 : vector<1xf32> to vector<1x1x1xf32>
    %36 = vector.extract %35[0, 0, 0] : f32 from vector<1x1x1xf32>
    %c0_10 = arith.constant 0 : index
    %c0_11 = arith.constant 0 : index
    %37 = memref.load %arg3[%c0_10, %c0_11] : memref<1x1xf32, #tpu.memory_space<smem>>
    memref.store %36, %arg3[%c0_10, %c0_11] : memref<1x1xf32, #tpu.memory_space<smem>>
    return
  }
  func.func @transform_0(%arg0: i32) -> (i32, i32) {
    %c0_i32 = arith.constant 0 : i32
    %c0_i32_0 = arith.constant 0 : i32
    return %arg0, %c0_i32 : i32, i32
  }
  func.func @transform_1(%arg0: i32) -> (i32, i32) {
    %c0_i32 = arith.constant 0 : i32
    %c0_i32_0 = arith.constant 0 : i32
    return %arg0, %c0_i32 : i32, i32
  }
  func.func @transform_2(%arg0: i32) -> (i32, i32) {
    %c0_i32 = arith.constant 0 : i32
    %c0_i32_0 = arith.constant 0 : i32
    return %arg0, %c0_i32 : i32, i32
  }
}

</mosaic_0001>

<bundles_post_ra>
// kernel: tpu_custom_call.1
= control target key start
LH: loop header
LB: loop body
LE: loop exit
PB: predicated region body
PF: predicated region fallthrough
CT: control target
= control target key end

     0   :  { %vm22_vm0 = vcmask 261120   ;;  %s130_s0 = inlined_call_operand.vmem [shape: f32[8,32], index: 0, kind: input, shape index: {}]   ;;  %s131_s1 = inlined_call_operand.vmem [shape: s32[8,1], index: 1, kind: input, shape index: {}]   ;;  %s132_s2 = inlined_call_operand.hbm [shape: f32[1,1], index: 2, kind: output, shape index: {}]  }
   0x1   :  { %v12_v0 = vld [vmem:[%s130_s0] sm:$0xff] }
   0x2   :  { %7 = vsyncpa [#allocation3], 0  ;;  %v23_v1 = vsel %vm22_vm0, %v12_v0, -inf  ;;  %v100_v2 = vmov 0   ;;  %v13_v3 = vld [vmem:[%s131_s1] sm:$0xff]  ;;  %v14_v7 = vlaneseq  ;;  %v101_v10 = vmov 0.0  }
   0x3   :  { %83 = vset.pattern.permute.xlu0 %v100_v2  ;;  %vm51_vm2 = vcmask 7168   ;;  %s102_s1 = smov [#allocation2]  }
   0x4   :  { %24 = vmax.xlane.f32.xlu0 %v23_v1  ;;  %v15_v8 = vand.u32 127, %v14_v7 }
  0x1a   :  { %17 = vperm.xlu0 %83, %v13_v3  }
  0x8d   :  { %v25_v4 = vpop.xlane.xlu0 %24 }
  0x8e   :  { %v26_v5 = vsub.f32 %v12_v0, %v25_v4 }
  0x90   :  { %v27_v6 = vmul.f32 1.442695, %v26_v5 }
  0x92   :  { %84 = vpow2.f32 %v27_v6 }
  0x95   :  { %v18_v9 = vpop.permute.xlu0 %17 }
  0x96   :  { %vm19_vm1 = vcmp.eq.s32.totalorder %v15_v8, %v18_v9 }
  0x97   :  { %v77_v11 = vsel %vm19_vm1, 1.0, %v101_v10 }
  0x98   :  { %v32_v14 = vmul.f32 %v77_v11, %v26_v5 }
  0x9a   :  { %v33_v15 = vsel %vm22_vm0, %v32_v14, 0.0 }
  0x9f   :  { %v85_v12 = vpop.eup %84 }
  0xa0   :  { %v29_v13 = vsel %vm22_vm0, %v85_v12, 0.0 }
  0xa1   :  { %30 = vadd.xlane.f32.xlu1 %v29_v13 }
  0xa5   :  { %34 = vadd.xlane.f32.xlu1 %v33_v15 }
 0x12a   :  { %v31_v16 = vpop.xlane.xlu1 %30 }
 0x12b   :  { %86 = vlog2.f32 %v31_v16 }
 0x12e   :  { %v35_v19 = vpop.xlane.xlu1 %34 }
 0x138   :  { %v87_v17 = vpop.eup %86 }
 0x139   :  { %v37_v18 = vmul.f32 0.6931472, %v87_v17 }
 0x13b   :  { %v38_v20 = vsub.f32 %v37_v18, %v35_v19 }
 0x13d   :  { %v39_v21 = vmul.f32 -0.7, %v38_v20 }
 0x13f   :  { %v40_v22 = vmul.f32 1.442695, %v39_v21 }
 0x141   :  { %88 = vpow2.f32 %v40_v22 }
 0x14e   :  { %v89_v23 = vpop.eup %88 }
 0x14f   :  { %v42_v24 = vmul.f32 0.7, %v89_v23 }
 0x151   :  { %v43_v25 = vmul.f32 %v42_v24, %v38_v20 }
 0x153   :  { %v52_v26 = vsel %vm51_vm2, %v43_v25, 0.0 }
 0x154   :  { %53 = vadd.xlane.f32.xlu1 %v52_v26 }
 0x1dd   :  { %v54_v27 = vpop.xlane.xlu1 %53 }
 0x1de   :  { %v55_v28 = vrot.slane %v54_v27, 4 }
 0x1e0   :  { %v56_v29 = vadd.f32 %v55_v28, %v54_v27 }
 0x1e2   :  { %v57_v30 = vrot.slane %v56_v29, 2 }
 0x1e4   :  { %v58_v31 = vadd.f32 %v57_v30, %v56_v29 }
 0x1e6   :  { %v59_v32 = vrot.slane %v58_v31, 1 }
 0x1e8   :  { %v60_v33 = vadd.f32 %v59_v32, %v58_v31 }
 0x1ea   :  { %78 = vpush %v60_v33 }
 0x21b   :  { %s79_s0 = spop %78 }
 0x21c   :  { %63 = sst [smem:[#allocation2]] %s79_s0 }
 0x21d   :  { %71 = dma.smem_to_hbm %s102_s1, 16, %s132_s2, [#allocation3]  }
 0x21e   :  { %98 = dma.done.wait [#allocation3], 16  }
 0x21f   :  { %99 = vsyncadd [#allocation3], 4294967280 }
 0x220   :  { %75 = sfence }
 0x221   :  { %76 = vsyncpa [#allocation3], 1 }

</bundles_post_ra>
